<compile_context>
chip_gen: v7x
topology: tpu7x:2x2x1
jax: 0.10.0
libtpu: 0.0.40
codegen_flags: <defaults>
</compile_context>

<pallas_src>
import jax
import jax.numpy as jnp
from jax.experimental import pallas as pl
from jax.experimental.pallas import tpu as pltpu

IN_FEATURES = 64 * 64 * 3      # 12288
H1 = 128
H2 = 64
NUM_CLASSES = 10
LANE = 128                     # lane-padded output width


def _round_up(n, m):
    return ((n + m - 1) // m) * m


def dog_fc_kernel(x_ref, w1_ref, b1_ref, w2_ref, b2_ref, w3_ref, b3_ref,
                  out_ref, acc_ref):
    """One (batch-tile, K-chunk) grid step.

    x_ref : (TB, TK) bf16      w1_ref: (TK, 128) bf16
    acc_ref: (TB, 128) f32 scratch, accumulates x @ W1 over the K axis.
    Layers 2/3 + bias/ReLU + store happen only on the last K step.
    """
    k = pl.program_id(1)

    @pl.when(k == 0)
    def _init():
        acc_ref[...] = jnp.zeros_like(acc_ref)

    # Partial first-layer matmul on the MXU (bf16 in, f32 accumulate).
    acc_ref[...] += jnp.dot(x_ref[...], w1_ref[...],
                            preferred_element_type=jnp.float32)

    @pl.when(k == pl.num_programs(1) - 1)
    def _finalize():
        h1 = jnp.maximum(acc_ref[...] + b1_ref[...], 0.0)               # (TB, 128)
        h2 = jnp.dot(h1, w2_ref[...], preferred_element_type=jnp.float32)
        h2 = jnp.maximum(h2 + b2_ref[...], 0.0)                          # (TB, 64)
        out = jnp.dot(h2, w3_ref[...], preferred_element_type=jnp.float32)
        out_ref[...] = out + b3_ref[...]                                 # (TB, 128)


def dog_classifier_fc(x, params, *, tb=None, tk=1536):
    """x: (B, 64, 64, 3) float32.  Returns (B, 10) float32 logits."""
    w1, b1, w2, b2, w3, b3 = params
    B = x.shape[0]

    # ---- glue (plain JAX): flatten, cast, pad -------------------------------
    x_flat = x.reshape(B, IN_FEATURES).astype(jnp.bfloat16)

    if tb is None:
        # Big tiles amortize per-step overhead; small B just uses one 8-row tile.
        tb = min(512, _round_up(max(B, 1), 8))
    b_pad = _round_up(B, tb)
    if b_pad != B:
        x_flat = jnp.pad(x_flat, ((0, b_pad - B), (0, 0)))

    assert IN_FEATURES % tk == 0, "tk must divide 12288"
    grid = (b_pad // tb, IN_FEATURES // tk)

    w1b = w1.astype(jnp.bfloat16)                                   # (12288, 128)
    b1r = b1.reshape(1, H1).astype(jnp.float32)
    w2f = w2.astype(jnp.float32)                                    # (128, 64)
    b2r = b2.reshape(1, H2).astype(jnp.float32)
    # Lane-dense padded head: (64, 128) / (1, 128), zeros beyond class 10.
    w3p = jnp.zeros((H2, LANE), jnp.float32).at[:, :NUM_CLASSES].set(
        w3.astype(jnp.float32))
    b3p = jnp.zeros((1, LANE), jnp.float32).at[:, :NUM_CLASSES].set(
        b3.reshape(1, NUM_CLASSES).astype(jnp.float32))

    out_padded = pl.pallas_call(
        dog_fc_kernel,
        out_shape=jax.ShapeDtypeStruct((b_pad, LANE), jnp.float32),
        grid=grid,
        in_specs=[
            pl.BlockSpec((tb, tk), lambda i, k: (i, k)),     # x tile
            pl.BlockSpec((tk, H1), lambda i, k: (k, 0)),     # W1 K-chunk (bf16)
            pl.BlockSpec((1, H1), lambda i, k: (0, 0)),      # b1 (resident)
            pl.BlockSpec((H1, H2), lambda i, k: (0, 0)),     # W2 (resident)
            pl.BlockSpec((1, H2), lambda i, k: (0, 0)),      # b2 (resident)
            pl.BlockSpec((H2, LANE), lambda i, k: (0, 0)),   # W3 padded (resident)
            pl.BlockSpec((1, LANE), lambda i, k: (0, 0)),    # b3 padded (resident)
        ],
        out_specs=pl.BlockSpec((tb, LANE), lambda i, k: (i, 0)),
        scratch_shapes=[pltpu.VMEM((tb, H1), jnp.float32)],  # h1 accumulator
        compiler_params=pltpu.CompilerParams(
            dimension_semantics=("parallel", "arbitrary"),
            vmem_limit_bytes=32 << 20,   # working set ~few MB; fits v5e/v6e/v7x
        ),
    )(x_flat, w1b, b1r, w2f, b2r, w3p, b3p)

    return out_padded[:B, :NUM_CLASSES]


def init_params(key):
    """Deterministic torch-style init.  Weights stored as (in, out), float32."""
    dims = [(IN_FEATURES, H1), (H1, H2), (H2, NUM_CLASSES)]
    params = []
    for i, (fan_in, fan_out) in enumerate(dims):
        kw, kb, key = jax.random.split(jax.random.fold_in(key, i), 3)
        bound = 1.0 / jnp.sqrt(fan_in)
        w = jax.random.uniform(kw, (fan_in, fan_out), jnp.float32, -bound, bound)
        b = jax.random.uniform(kb, (fan_out,), jnp.float32, -bound, bound)
        params += [w, b]
    return tuple(params)


def reference_forward(x, params):
    """Pure-JAX reference matching the kernel's numerics (bf16 first layer)."""
    w1, b1, w2, b2, w3, b3 = params
    h = x.reshape(x.shape[0], -1)
    h1 = jnp.dot(h.astype(jnp.bfloat16), w1.astype(jnp.bfloat16),
                 preferred_element_type=jnp.float32) + b1
    h1 = jax.nn.relu(h1)
    h2 = jax.nn.relu(jnp.dot(h1, w2, preferred_element_type=jnp.float32) + b2)
    return jnp.dot(h2, w3, preferred_element_type=jnp.float32) + b3


if __name__ == "__main__":
    key = jax.random.PRNGKey(0)
    kx, kp = jax.random.split(key)

    B = 4
    x = jax.random.normal(kx, (B, 64, 64, 3), dtype=jnp.float32)
    params = init_params(kp)

    fwd = jax.jit(dog_classifier_fc)
    out = jax.block_until_ready(fwd(x, params))

    ref = reference_forward(x, params)
    assert out.shape == (B, NUM_CLASSES)
    assert jnp.allclose(out, ref, atol=2e-2, rtol=2e-2), (
        f"max abs err = {jnp.max(jnp.abs(out - ref))}")

    print("KERNEL_OK")
</pallas_src>

<mosaic_0001>
module attributes {stable_mosaic.version = 11 : i64} {
  func.func @dog_fc_kernel(%arg0: i32, %arg1: i32, %arg2: memref<8x1536xbf16, #tpu.memory_space<vmem>>, %arg3: memref<1536x128xbf16, #tpu.memory_space<vmem>>, %arg4: memref<1x128xf32, #tpu.memory_space<vmem>>, %arg5: memref<128x64xf32, #tpu.memory_space<vmem>>, %arg6: memref<1x64xf32, #tpu.memory_space<vmem>>, %arg7: memref<64x128xf32, #tpu.memory_space<vmem>>, %arg8: memref<1x128xf32, #tpu.memory_space<vmem>>, %arg9: memref<8x128xf32, #tpu.memory_space<vmem>>, %arg10: memref<8x128xf32, #tpu.memory_space<vmem>>) attributes {dimension_semantics = [#tpu.dimension_semantics<parallel>, #tpu.dimension_semantics<arbitrary>], iteration_bounds = array<i64: 1, 8>, scalar_prefetch = 0 : i64, scratch_operands = 1 : i64, tpu.core_type = #tpu.core_type<tc>, window_params = [{transform_indices = @transform_0, window_bounds = array<i64: 8, 1536>}, {transform_indices = @transform_1, window_bounds = array<i64: 1536, 128>}, {pipeline_mode = #tpu.pipeline_mode<synchronous>, transform_indices = @transform_2, window_bounds = array<i64: 1, 128>}, {pipeline_mode = #tpu.pipeline_mode<synchronous>, transform_indices = @transform_3, window_bounds = array<i64: 128, 64>}, {pipeline_mode = #tpu.pipeline_mode<synchronous>, transform_indices = @transform_4, window_bounds = array<i64: 1, 64>}, {pipeline_mode = #tpu.pipeline_mode<synchronous>, transform_indices = @transform_5, window_bounds = array<i64: 64, 128>}, {pipeline_mode = #tpu.pipeline_mode<synchronous>, transform_indices = @transform_6, window_bounds = array<i64: 1, 128>}, {transform_indices = @transform_7, window_bounds = array<i64: 8, 128>}]} {
    %c0_i32 = arith.constant 0 : i32
    %0 = arith.cmpi eq, %arg1, %c0_i32 : i32
    %1 = arith.extui %0 : i1 to i32
    %c0_i32_0 = arith.constant 0 : i32
    %2 = arith.cmpi ne, %1, %c0_i32_0 : i32
    scf.if %2 {
      %cst_9 = arith.constant 0.000000e+00 : f32
      %12 = vector.broadcast %cst_9 : f32 to vector<8x128xf32>
      %c0_10 = arith.constant 0 : index
      %c0_11 = arith.constant 0 : index
      %13 = vector.load %arg10[%c0_10, %c0_11] : memref<8x128xf32, #tpu.memory_space<vmem>>, vector<8x128xf32>
      tpu.vector_store %arg10[%c0_10, %c0_11], %12 {strides = array<i32>} : memref<8x128xf32, #tpu.memory_space<vmem>>, vector<8x128xf32>,
    } else {
    }
    %c0 = arith.constant 0 : index
    %c0_1 = arith.constant 0 : index
    %3 = vector.load %arg10[%c0, %c0_1] : memref<8x128xf32, #tpu.memory_space<vmem>>, vector<8x128xf32>
    %c0_2 = arith.constant 0 : index
    %c0_3 = arith.constant 0 : index
    %4 = vector.load %arg2[%c0_2, %c0_3] : memref<8x1536xbf16, #tpu.memory_space<vmem>>, vector<8x1536xbf16>
    %c0_4 = arith.constant 0 : index
    %c0_5 = arith.constant 0 : index
    %5 = vector.load %arg3[%c0_4, %c0_5] : memref<1536x128xbf16, #tpu.memory_space<vmem>>, vector<1536x128xbf16>
    %cst = arith.constant dense<0.000000e+00> : vector<8x128xf32>
    %6 = tpu.matmul %4, %5, %cst {dimension_numbers = #tpu.dot_dimension_numbers<[1], [0], [0], [1], [0, 0, 1, 1], [], []>} : vector<8x1536xbf16>, vector<1536x128xbf16>, vector<8x128xf32> -> vector<8x128xf32>
    %7 = arith.addf %3, %6 : vector<8x128xf32>
    %c0_6 = arith.constant 0 : index
    %c0_7 = arith.constant 0 : index
    %8 = vector.load %arg10[%c0_6, %c0_7] : memref<8x128xf32, #tpu.memory_space<vmem>>, vector<8x128xf32>
    tpu.vector_store %arg10[%c0_6, %c0_7], %7 {strides = array<i32>} : memref<8x128xf32, #tpu.memory_space<vmem>>, vector<8x128xf32>,
    %c7_i32 = arith.constant 7 : i32
    %9 = arith.cmpi eq, %arg1, %c7_i32 : i32
    %10 = arith.extui %9 : i1 to i32
    %c0_i32_8 = arith.constant 0 : i32
    %11 = arith.cmpi ne, %10, %c0_i32_8 : i32
    scf.if %11 {
      %c0_9 = arith.constant 0 : index
      %c0_10 = arith.constant 0 : index
      %12 = vector.load %arg10[%c0_9, %c0_10] : memref<8x128xf32, #tpu.memory_space<vmem>>, vector<8x128xf32>
      %c0_11 = arith.constant 0 : index
      %c0_12 = arith.constant 0 : index
      %13 = vector.load %arg4[%c0_11, %c0_12] : memref<1x128xf32, #tpu.memory_space<vmem>>, vector<1x128xf32>
      %14 = vector.broadcast %13 : vector<1x128xf32> to vector<8x128xf32>
      %15 = arith.addf %12, %14 : vector<8x128xf32>
      %cst_13 = arith.constant 0.000000e+00 : f32
      %16 = vector.broadcast %cst_13 : f32 to vector<8x128xf32>
      %17 = arith.maximumf %15, %16 : vector<8x128xf32>
      %c0_14 = arith.constant 0 : index
      %c0_15 = arith.constant 0 : index
      %18 = vector.load %arg5[%c0_14, %c0_15] : memref<128x64xf32, #tpu.memory_space<vmem>>, vector<128x64xf32>
      %cst_16 = arith.constant dense<0.000000e+00> : vector<8x64xf32>
      %19 = tpu.matmul %17, %18, %cst_16 {dimension_numbers = #tpu.dot_dimension_numbers<[1], [0], [0], [1], [0, 0, 1, 1], [], []>} : vector<8x128xf32>, vector<128x64xf32>, vector<8x64xf32> -> vector<8x64xf32>
      %c0_17 = arith.constant 0 : index
      %c0_18 = arith.constant 0 : index
      %20 = vector.load %arg6[%c0_17, %c0_18] : memref<1x64xf32, #tpu.memory_space<vmem>>, vector<1x64xf32>
      %21 = vector.broadcast %20 : vector<1x64xf32> to vector<8x64xf32>
      %22 = arith.addf %19, %21 : vector<8x64xf32>
      %cst_19 = arith.constant 0.000000e+00 : f32
      %23 = vector.broadcast %cst_19 : f32 to vector<8x64xf32>
      %24 = arith.maximumf %22, %23 : vector<8x64xf32>
      %c0_20 = arith.constant 0 : index
      %c0_21 = arith.constant 0 : index
      %25 = vector.load %arg7[%c0_20, %c0_21] : memref<64x128xf32, #tpu.memory_space<vmem>>, vector<64x128xf32>
      %cst_22 = arith.constant dense<0.000000e+00> : vector<8x128xf32>
      %26 = tpu.matmul %24, %25, %cst_22 {dimension_numbers = #tpu.dot_dimension_numbers<[1], [0], [0], [1], [0, 0, 1, 1], [], []>} : vector<8x64xf32>, vector<64x128xf32>, vector<8x128xf32> -> vector<8x128xf32>
      %c0_23 = arith.constant 0 : index
      %c0_24 = arith.constant 0 : index
      %27 = vector.load %arg8[%c0_23, %c0_24] : memref<1x128xf32, #tpu.memory_space<vmem>>, vector<1x128xf32>
      %28 = vector.broadcast %27 : vector<1x128xf32> to vector<8x128xf32>
      %29 = arith.addf %26, %28 : vector<8x128xf32>
      %c0_25 = arith.constant 0 : index
      %c0_26 = arith.constant 0 : index
      %30 = vector.load %arg9[%c0_25, %c0_26] : memref<8x128xf32, #tpu.memory_space<vmem>>, vector<8x128xf32>
      tpu.vector_store %arg9[%c0_25, %c0_26], %29 {strides = array<i32>} : memref<8x128xf32, #tpu.memory_space<vmem>>, vector<8x128xf32>,
    } else {
    }
    return
  }
  func.func @transform_0(%arg0: i32, %arg1: i32) -> (i32, i32) {
    %c0_i32 = arith.constant 0 : i32
    return %arg0, %arg1 : i32, i32
  }
  func.func @transform_1(%arg0: i32, %arg1: i32) -> (i32, i32) {
    %c0_i32 = arith.constant 0 : i32
    %c0_i32_0 = arith.constant 0 : i32
    return %arg1, %c0_i32 : i32, i32
  }
  func.func @transform_2(%arg0: i32, %arg1: i32) -> (i32, i32) {
    %c0_i32 = arith.constant 0 : i32
    %c0_i32_0 = arith.constant 0 : i32
    %c0_i32_1 = arith.constant 0 : i32
    return %c0_i32, %c0_i32_0 : i32, i32
  }
  func.func @transform_3(%arg0: i32, %arg1: i32) -> (i32, i32) {
    %c0_i32 = arith.constant 0 : i32
    %c0_i32_0 = arith.constant 0 : i32
    %c0_i32_1 = arith.constant 0 : i32
    return %c0_i32, %c0_i32_0 : i32, i32
  }
  func.func @transform_4(%arg0: i32, %arg1: i32) -> (i32, i32) {
    %c0_i32 = arith.constant 0 : i32
    %c0_i32_0 = arith.constant 0 : i32
    %c0_i32_1 = arith.constant 0 : i32
    return %c0_i32, %c0_i32_0 : i32, i32
  }
  func.func @transform_5(%arg0: i32, %arg1: i32) -> (i32, i32) {
    %c0_i32 = arith.constant 0 : i32
    %c0_i32_0 = arith.constant 0 : i32
    %c0_i32_1 = arith.constant 0 : i32
    return %c0_i32, %c0_i32_0 : i32, i32
  }
  func.func @transform_6(%arg0: i32, %arg1: i32) -> (i32, i32) {
    %c0_i32 = arith.constant 0 : i32
    %c0_i32_0 = arith.constant 0 : i32
    %c0_i32_1 = arith.constant 0 : i32
    return %c0_i32, %c0_i32_0 : i32, i32
  }
  func.func @transform_7(%arg0: i32, %arg1: i32) -> (i32, i32) {
    %c0_i32 = arith.constant 0 : i32
    %c0_i32_0 = arith.constant 0 : i32
    return %arg0, %c0_i32 : i32, i32
  }
}

</mosaic_0001>

<bundles_post_ra>
// kernel: dog_classifier_fc.1
= control target key start
LH: loop header
LB: loop body
LE: loop exit
PB: predicated region body
PF: predicated region fallthrough
CT: control target
= control target key end

     0   :  { %s2242_s24 = smov 0   ;;  %s2244_s25 = smov 0   ;;  %s2471_s0 = inlined_call_operand.vmem [shape: bf16[8,12288], index: 0, kind: input, shape index: {}]   ;;  %s2472_s1 = inlined_call_operand.vmem [shape: bf16[12288,128], index: 1, kind: input, shape index: {}]   ;;  %s2473_s2 = inlined_call_operand.vmem [shape: f32[1,128], index: 2, kind: input, shape index: {}]   ;;  %s2474_s3 = inlined_call_operand.vmem [shape: f32[128,64], index: 3, kind: input, shape index: {}]   ;;  %s2475_s4 = inlined_call_operand.vmem [shape: f32[1,64], index: 4, kind: input, shape index: {}]   ;;  %s2476_s5 = inlined_call_operand.vmem [shape: f32[64,128], index: 5, kind: input, shape index: {}]   ;;  %s2477_s6 = inlined_call_operand.vmem [shape: f32[1,128], index: 6, kind: input, shape index: {}]   ;;  %s2478_s7 = inlined_call_operand.vmem [shape: f32[8,128], index: 7, kind: output, shape index: {}]  }
   0x1   :  { %s2246_s26 = smov 0  }
   0x2 LB: > { %s26_s27 = sadd.s32 1, %s2192_s25  ;;  %p1670_p0 = scmp.ge.s32.totalorder %s2196_s26, 1  ;;  %s2196_s26 = sphi %s2246_s26, %s17_s26   ;;  %s2192_s25 = sphi %s2244_s25, %s2480_s25   ;;  %s2188_s24 = sphi %s2242_s24, %s2479_s24  }
   0x3   : > { %p27_p1 = scmp.ge.s32.totalorder %s26_s27, 8  ;;  %p267_p2 = scmp.lt.s32.totalorder %s2196_s26, 9 }
   0x5   : > { %s2482_s27 = smov (%p27_p1, %s26_s27), 0  ;;  %p268_p3 = pnand %p1670_p0, %p267_p2 }
   0x6   : > { %s307_s28 = smul.u32 (!%p268_p3), 12, %s2188_s24  ;;  %p1673_p6 = scmp.ne.s32.totalorder (!%p268_p3), %s2188_s24, 0 }
   0x7   : > { %271 = sbr.rel (%p268_p3) target bundleno = 786 (0x312), region = 48 }
   0x8   : > { %s317_s29 = smul.u32 (!%p268_p3), 192, %s2188_s24  ;;  %p310_p4 = scmp.lt.s32.totalorder (!%p268_p3), %s307_s28, 95 }
   0xa   : > { %p318_p5 = scmp.lt.s32.totalorder (!%p268_p3), %s317_s29, 1535 }
   0xe   : > { %s2484_s28 = smov (!%p310_p4, %s307_s28), 95  ;;  %s2486_s29 = smov (!%p318_p5, %s317_s29), 1535 }
   0xf   : > { %s1671_s30 = sshll.u32 %s2484_s28, 2  ;;  %s1672_s11 = sshll.u32 %s2486_s29, 2  ;;  %v2198_v0 = vmov (!%p1673_p6), 0.0  }
  0x10   : > { %s2267_s10 = scalar_lea.vmem %s2471_s0, %s1671_s30  ;;  %s2272_s14 = scalar_lea.vmem %s2472_s1, %s1672_s11  ;;  %332 = vst [vmem:[#allocation2] sm:$0xff] (!%p1673_p6), %v2198_v0 }
  0x11   : > { %331 = sbr.rel (%p1673_p6) target bundleno = 24 (0x18), region = 52 }
  0x18 PF: > { %v2066_v1 = vld [vmem:[%s2272_s14 + $0x40] sm:$0xff]   ;;  %v2070_v5 = vld [vmem:[%s2272_s14 + $0x48] sm:$0xff]   ;;  %v2074_v9 = vld [vmem:[%s2272_s14 + $0x50] sm:$0xff]   ;;  %p1782_p7 = scmp.ne.s32.totalorder %s2188_s24, 7 }
  0x19   : > { %v2067_v2 = vld [vmem:[%s2272_s14 + $0xc0] sm:$0xff]   ;;  %1790 = vmatprep.subr.bf16.mxu0 %v2066_v1  ;;  %v2071_v6 = vld [vmem:[%s2272_s14 + $0xc8] sm:$0xff]   ;;  %v2075_v10 = vld [vmem:[%s2272_s14 + $0xd0] sm:$0xff]   ;;  %vm2200_vm0 = vmmov (!%p1782_p7), 0   ;;  %vm1515_vm1 = vcmask (!%p1782_p7), 523264  }
  0x1a   : > { %v2068_v3 = vld [vmem:[%s2272_s14] sm:$0xff]   ;;  %1812 = vmatprep.subr.bf16.mxu1 %v2067_v2  ;;  %v2072_v7 = vld [vmem:[%s2272_s14 + $0x8] sm:$0xff]   ;;  %v2076_v11 = vld [vmem:[%s2272_s14 + $0x10] sm:$0xff]  }
  0x1b   : > { %v2069_v4 = vld [vmem:[%s2272_s14 + $0x80] sm:$0xff]   ;;  %1791 = vmatpush3.bf16.msra.mxu0 %v2068_v3  ;;  %v2073_v8 = vld [vmem:[%s2272_s14 + $0x88] sm:$0xff]   ;;  %v2077_v12 = vld [vmem:[%s2272_s14 + $0x90] sm:$0xff]  }
  0x1c   : > { %1813 = vmatpush3.bf16.msra.mxu1 %v2069_v4  ;;  %1792 = vmatprep.subr.bf16.mxu0 %v2070_v5  ;;  %v2078_v13 = vld [vmem:[%s2272_s14 + $0x58] sm:$0xff]   ;;  %v2082_v17 = vld [vmem:[%s2272_s14 + $0x60] sm:$0xff]   ;;  %v2086_v21 = vld [vmem:[%s2272_s14 + $0x68] sm:$0xff]  }
  0x1d   : > { %1814 = vmatprep.subr.bf16.mxu1 %v2071_v6  ;;  %v2079_v14 = vld [vmem:[%s2272_s14 + $0xd8] sm:$0xff]   ;;  %v2083_v18 = vld [vmem:[%s2272_s14 + $0xe0] sm:$0xff]   ;;  %v2087_v22 = vld [vmem:[%s2272_s14 + $0xe8] sm:$0xff]  }
  0x1e   : > { %v2080_v15 = vld [vmem:[%s2272_s14 + $0x18] sm:$0xff]   ;;  %v2084_v19 = vld [vmem:[%s2272_s14 + $0x20] sm:$0xff]   ;;  %v2088_v23 = vld [vmem:[%s2272_s14 + $0x28] sm:$0xff]  }
  0x1f   : > { %1793 = vmatpush3.bf16.msra.mxu0 %v2072_v7  ;;  %v2081_v16 = vld [vmem:[%s2272_s14 + $0x98] sm:$0xff]   ;;  %v2085_v20 = vld [vmem:[%s2272_s14 + $0xa0] sm:$0xff]   ;;  %v2089_v24 = vld [vmem:[%s2272_s14 + $0xa8] sm:$0xff]  }
  0x20   : > { %1815 = vmatpush3.bf16.msra.mxu1 %v2073_v8  ;;  %1794 = vmatprep.subr.bf16.mxu0 %v2074_v9  ;;  %v2090_v25 = vld [vmem:[%s2272_s14 + $0x70] sm:$0xff]   ;;  %v2094_v29 = vld [vmem:[%s2272_s14 + $0x78] sm:$0xff]   ;;  %v334_v33 = vld [vmem:[%s2267_s10] sm:$0xff] }
  0x21   : > { %1816 = vmatprep.subr.bf16.mxu1 %v2075_v10  ;;  %v2091_v26 = vld [vmem:[%s2272_s14 + $0xf0] sm:$0xff]   ;;  %v2095_v30 = vld [vmem:[%s2272_s14 + $0xf8] sm:$0xff]   ;;  %v335_v34 = vld [vmem:[%s2267_s10 + $0x8] sm:$0xff]  ;;  %v1674_v35 = vcombine.low %v334_v33, %v334_v33  ;;  %v1675_v36 = vcombine.high %v334_v33, %v334_v33 }
  0x22   : > { %v2092_v27 = vld [vmem:[%s2272_s14 + $0x30] sm:$0xff]   ;;  %v2096_v31 = vld [vmem:[%s2272_s14 + $0x38] sm:$0xff]   ;;  %v1676_v37 = vcombine.low %v335_v34, %v335_v34  ;;  %v1677_v38 = vcombine.high %v335_v34, %v335_v34  ;;  %v2102_v39 = vld [vmem:[%s2272_s14 + $0x140] sm:$0xff]  }
  0x23   : > { %1795 = vmatpush3.bf16.msra.mxu0 %v2076_v11  ;;  %v2093_v28 = vld [vmem:[%s2272_s14 + $0xb0] sm:$0xff]   ;;  %v2097_v32 = vld [vmem:[%s2272_s14 + $0xb8] sm:$0xff]   ;;  %v2103_v40 = vld [vmem:[%s2272_s14 + $0x1c0] sm:$0xff]   ;;  %1182 = vmatprep.mubr.bf16.mxu0 %v1675_v36 }
  0x24   : > { %1817 = vmatpush3.bf16.msra.mxu1 %v2077_v12  ;;  %1796 = vmatprep.subr.bf16.mxu0 %v2078_v13  ;;  %v2104_v41 = vld [vmem:[%s2272_s14 + $0x100] sm:$0xff]   ;;  %v2106_v43 = vld [vmem:[%s2272_s14 + $0x148] sm:$0xff]   ;;  %v2110_v47 = vld [vmem:[%s2272_s14 + $0x150] sm:$0xff]  }
  0x25   : > { %1818 = vmatprep.subr.bf16.mxu1 %v2079_v14  ;;  %1222 = vmatprep.mubr.bf16.mxu1 %v1677_v38  ;;  %v2105_v42 = vld [vmem:[%s2272_s14 + $0x180] sm:$0xff]   ;;  %v2107_v44 = vld [vmem:[%s2272_s14 + $0x1c8] sm:$0xff]   ;;  %v2111_v48 = vld [vmem:[%s2272_s14 + $0x1d0] sm:$0xff]  }
  0x26   : > { %v2108_v45 = vld [vmem:[%s2272_s14 + $0x108] sm:$0xff]   ;;  %v2112_v49 = vld [vmem:[%s2272_s14 + $0x110] sm:$0xff]   ;;  %v2114_v51 = vld [vmem:[%s2272_s14 + $0x158] sm:$0xff]  }
  0x27   : > { %1797 = vmatpush3.bf16.msra.mxu0 %v2080_v15  ;;  %v2109_v46 = vld [vmem:[%s2272_s14 + $0x188] sm:$0xff]   ;;  %v2113_v50 = vld [vmem:[%s2272_s14 + $0x190] sm:$0xff]   ;;  %v2115_v52 = vld [vmem:[%s2272_s14 + $0x1d8] sm:$0xff]  }
  0x28   : > { %1819 = vmatpush3.bf16.msra.mxu1 %v2081_v16  ;;  %1798 = vmatprep.subr.bf16.mxu0 %v2082_v17  ;;  %v2116_v53 = vld [vmem:[%s2272_s14 + $0x118] sm:$0xff]   ;;  %v2118_v55 = vld [vmem:[%s2272_s14 + $0x160] sm:$0xff]   ;;  %v2122_v59 = vld [vmem:[%s2272_s14 + $0x168] sm:$0xff]  }
  0x29   : > { %1820 = vmatprep.subr.bf16.mxu1 %v2083_v18  ;;  %v2117_v54 = vld [vmem:[%s2272_s14 + $0x198] sm:$0xff]   ;;  %v2119_v56 = vld [vmem:[%s2272_s14 + $0x1e0] sm:$0xff]   ;;  %v2123_v60 = vld [vmem:[%s2272_s14 + $0x1e8] sm:$0xff]  }
  0x2a   : > { %v2120_v57 = vld [vmem:[%s2272_s14 + $0x120] sm:$0xff]   ;;  %v2124_v61 = vld [vmem:[%s2272_s14 + $0x128] sm:$0xff]   ;;  %v2126_v63 = vld [vmem:[%s2272_s14 + $0x170] sm:$0xff]  }
  0x2b   : > { %1799 = vmatpush3.bf16.msra.mxu0 %v2084_v19  ;;  %v2121_v58 = vld [vmem:[%s2272_s14 + $0x1a0] sm:$0xff]   ;;  %v2125_v62 = vld [vmem:[%s2272_s14 + $0x1a8] sm:$0xff]   ;;  %v2127_v0 = vld [vmem:[%s2272_s14 + $0x1f0] sm:$0xff]  }
  0x2c   : > { %1821 = vmatpush3.bf16.msra.mxu1 %v2085_v20  ;;  %1800 = vmatprep.subr.bf16.mxu0 %v2086_v21  ;;  %v2128_v1 = vld [vmem:[%s2272_s14 + $0x130] sm:$0xff]   ;;  %v2130_v3 = vld [vmem:[%s2272_s14 + $0x178] sm:$0xff]   ;;  %v2138_v13 = vld [vmem:[%s2272_s14 + $0x240] sm:$0xff]  }
  0x2d   : > { %1822 = vmatprep.subr.bf16.mxu1 %v2087_v22  ;;  %v2129_v2 = vld [vmem:[%s2272_s14 + $0x1b0] sm:$0xff]   ;;  %v2131_v4 = vld [vmem:[%s2272_s14 + $0x1f8] sm:$0xff]   ;;  %v2139_v14 = vld [vmem:[%s2272_s14 + $0x2c0] sm:$0xff]  }
  0x2e   : > { %v2132_v5 = vld [vmem:[%s2272_s14 + $0x138] sm:$0xff]   ;;  %v336_v7 = vld [vmem:[%s2267_s10 + $0x10] sm:$0xff]  ;;  %v2140_v15 = vld [vmem:[%s2272_s14 + $0x200] sm:$0xff]  }
  0x2f   : > { %1801 = vmatpush3.bf16.msra.mxu0 %v2088_v23  ;;  %v2133_v6 = vld [vmem:[%s2272_s14 + $0x1b8] sm:$0xff]   ;;  %v1678_v8 = vcombine.low %v336_v7, %v336_v7  ;;  %v1679_v9 = vcombine.high %v336_v7, %v336_v7  ;;  %v2141_v16 = vld [vmem:[%s2272_s14 + $0x280] sm:$0xff]   ;;  %v2142_v17 = vld [vmem:[%s2272_s14 + $0x248] sm:$0xff]  }
  0x30   : > { %1823 = vmatpush3.bf16.msra.mxu1 %v2089_v24  ;;  %1802 = vmatprep.subr.bf16.mxu0 %v2090_v25  ;;  %v337_v10 = vld [vmem:[%s2267_s10 + $0x18] sm:$0xff]  ;;  %v2143_v18 = vld [vmem:[%s2272_s14 + $0x2c8] sm:$0xff]   ;;  %v2146_v21 = vld [vmem:[%s2272_s14 + $0x250] sm:$0xff]  }
  0x31   : > { %1824 = vmatprep.subr.bf16.mxu1 %v2091_v26  ;;  %v1680_v11 = vcombine.low %v337_v10, %v337_v10  ;;  %v1681_v12 = vcombine.high %v337_v10, %v337_v10  ;;  %v2144_v19 = vld [vmem:[%s2272_s14 + $0x208] sm:$0xff]   ;;  %v2147_v22 = vld [vmem:[%s2272_s14 + $0x2d0] sm:$0xff]   ;;  %v2150_v25 = vld [vmem:[%s2272_s14 + $0x258] sm:$0xff]  }
  0x32   : > { %v2145_v20 = vld [vmem:[%s2272_s14 + $0x288] sm:$0xff]   ;;  %v2148_v23 = vld [vmem:[%s2272_s14 + $0x210] sm:$0xff]   ;;  %v2151_v26 = vld [vmem:[%s2272_s14 + $0x2d8] sm:$0xff]  }
  0x33   : > { %1803 = vmatpush3.bf16.msra.mxu0 %v2092_v27  ;;  %v2149_v24 = vld [vmem:[%s2272_s14 + $0x290] sm:$0xff]   ;;  %v2152_v27 = vld [vmem:[%s2272_s14 + $0x218] sm:$0xff]   ;;  %v2158_v33 = vld [vmem:[%s2272_s14 + $0x268] sm:$0xff]  }
  0x34   : > { %1825 = vmatpush3.bf16.msra.mxu1 %v2093_v28  ;;  %1804 = vmatprep.subr.bf16.mxu0 %v2094_v29  ;;  %v2153_v28 = vld [vmem:[%s2272_s14 + $0x298] sm:$0xff]   ;;  %v2154_v29 = vld [vmem:[%s2272_s14 + $0x260] sm:$0xff]   ;;  %v2159_v34 = vld [vmem:[%s2272_s14 + $0x2e8] sm:$0xff]  }
  0x35   : > { %1826 = vmatprep.subr.bf16.mxu1 %v2095_v30  ;;  %v2155_v30 = vld [vmem:[%s2272_s14 + $0x2e0] sm:$0xff]   ;;  %v2161_v36 = vld [vmem:[%s2272_s14 + $0x2a8] sm:$0xff]   ;;  %v2163_v38 = vld [vmem:[%s2272_s14 + $0x2f0] sm:$0xff]  }
  0x37   : > { %1805 = vmatpush3.bf16.msra.mxu0 %v2096_v31  ;;  %v2156_v31 = vld [vmem:[%s2272_s14 + $0x220] sm:$0xff]  }
  0x38   : > { %1827 = vmatpush3.bf16.msra.mxu1 %v2097_v32  ;;  %1834 = vmatprep.subr.bf16.mxu0 %v2102_v39  ;;  %v2157_v32 = vld [vmem:[%s2272_s14 + $0x2a0] sm:$0xff]   ;;  %v2164_v39 = vld [vmem:[%s2272_s14 + $0x230] sm:$0xff]  }
  0x39   : > { %1856 = vmatprep.subr.bf16.mxu1 %v2103_v40  ;;  %v2165_v40 = vld [vmem:[%s2272_s14 + $0x2b0] sm:$0xff]  }
  0x3a   : > { %1183 = vmatmul.mubr.bf16.vlgmr.msra.gmra.mrb[0].mxu0 %v1674_v35  ;;  %v2160_v35 = vld [vmem:[%s2272_s14 + $0x228] sm:$0xff]  }
  0x3b   : > { %1223 = vmatmul.mubr.bf16.vlgmr.msra.gmra.mrb[0].mxu1 %v1676_v37  ;;  %1835 = vmatpush3.bf16.msra.mxu0 %v2104_v41  ;;  %v2162_v37 = vld [vmem:[%s2272_s14 + $0x270] sm:$0xff]   ;;  %v2166_v41 = vld [vmem:[%s2272_s14 + $0x278] sm:$0xff]  }
  0x3c   : > { %1857 = vmatpush3.bf16.msra.mxu1 %v2105_v42  ;;  %1836 = vmatprep.subr.bf16.mxu0 %v2106_v43  ;;  %v2167_v42 = vld [vmem:[%s2272_s14 + $0x2f8] sm:$0xff]  }
  0x3d   : > { %1858 = vmatprep.subr.bf16.mxu1 %v2107_v44  ;;  %1262 = vmatprep.mubr.bf16.mxu0 %v1679_v9  ;;  %v2168_v43 = vld [vmem:[%s2272_s14 + $0x238] sm:$0xff]  }
  0x3e   : > { %1302 = vmatprep.mubr.bf16.mxu1 %v1681_v12  ;;  %v2169_v44 = vld [vmem:[%s2272_s14 + $0x2b8] sm:$0xff]  }
  0x3f   : > { %1837 = vmatpush3.bf16.msra.mxu0 %v2108_v45  ;;  %v338_v45 = vld [vmem:[%s2267_s10 + $0x20] sm:$0xff] }
  0x40   : > { %1859 = vmatpush3.bf16.msra.mxu1 %v2109_v46  ;;  %1838 = vmatprep.subr.bf16.mxu0 %v2110_v47  ;;  %v339_v46 = vld [vmem:[%s2267_s10 + $0x28] sm:$0xff]  ;;  %v1682_v47 = vcombine.low %v338_v45, %v338_v45 }
  0x41   : > { %1860 = vmatprep.subr.bf16.mxu1 %v2111_v48  ;;  %v1683_v48 = vcombine.high %v338_v45, %v338_v45 }
  0x43   : > { %1839 = vmatpush3.bf16.msra.mxu0 %v2112_v49  ;;  %v1684_v49 = vcombine.low %v339_v46, %v339_v46 }
  0x44   : > { %1861 = vmatpush3.bf16.msra.mxu1 %v2113_v50  ;;  %1840 = vmatprep.subr.bf16.mxu0 %v2114_v51  ;;  %v1685_v50 = vcombine.high %v339_v46, %v339_v46  ;;  %v1414_v46 = vld [vmem:[%s2474_s3 + $0x40] sm:$0xff] (!%p1782_p7) }
  0x45   : > { %1862 = vmatprep.subr.bf16.mxu1 %v2115_v52 }
  0x47   : > { %1841 = vmatpush3.bf16.msra.mxu0 %v2116_v53 }
  0x48   : > { %1863 = vmatpush3.bf16.msra.mxu1 %v2117_v54  ;;  %1842 = vmatprep.subr.bf16.mxu0 %v2118_v55 }
  0x49   : > { %1864 = vmatprep.subr.bf16.mxu1 %v2119_v56 }
  0x4b   : > { %1843 = vmatpush3.bf16.msra.mxu0 %v2120_v57 }
  0x4c   : > { %1865 = vmatpush3.bf16.msra.mxu1 %v2121_v58  ;;  %1844 = vmatprep.subr.bf16.mxu0 %v2122_v59 }
  0x4d   : > { %1866 = vmatprep.subr.bf16.mxu1 %v2123_v60 }
  0x4f   : > { %1845 = vmatpush3.bf16.msra.mxu0 %v2124_v61 }
  0x50   : > { %1867 = vmatpush3.bf16.msra.mxu1 %v2125_v62  ;;  %1846 = vmatprep.subr.bf16.mxu0 %v2126_v63 }
  0x51   : > { %1868 = vmatprep.subr.bf16.mxu1 %v2127_v0 }
  0x53   : > { %1847 = vmatpush3.bf16.msra.mxu0 %v2128_v1 }
  0x54   : > { %1869 = vmatpush3.bf16.msra.mxu1 %v2129_v2  ;;  %1848 = vmatprep.subr.bf16.mxu0 %v2130_v3 }
  0x55   : > { %1870 = vmatprep.subr.bf16.mxu1 %v2131_v4 }
  0x57   : > { %1849 = vmatpush3.bf16.msra.mxu0 %v2132_v5 }
  0x58   : > { %1871 = vmatpush3.bf16.msra.mxu1 %v2133_v6  ;;  %1878 = vmatprep.subr.bf16.mxu0 %v2138_v13 }
  0x59   : > { %1900 = vmatprep.subr.bf16.mxu1 %v2139_v14 }
  0x5a   : > { %1263 = vmatmul.mubr.bf16.vlgmr.msra.gmra.mrb[4].mxu0 %v1678_v8 }
  0x5b   : > { %1303 = vmatmul.mubr.bf16.vlgmr.msra.gmra.mrb[4].mxu1 %v1680_v11  ;;  %1879 = vmatpush3.bf16.msra.mxu0 %v2140_v15 }
  0x5c   : > { %1901 = vmatpush3.bf16.msra.mxu1 %v2141_v16  ;;  %1880 = vmatprep.subr.bf16.mxu0 %v2142_v17 }
  0x5d   : > { %1902 = vmatprep.subr.bf16.mxu1 %v2143_v18  ;;  %1342 = vmatprep.mubr.bf16.mxu0 %v1683_v48 }
  0x5e   : > { %1382 = vmatprep.mubr.bf16.mxu1 %v1685_v50  ;;  %v1416_v50 = vld [vmem:[%s2474_s3 + $0x50] sm:$0xff] (!%p1782_p7) }
  0x5f   : > { %1881 = vmatpush3.bf16.msra.mxu0 %v2144_v19 }
  0x60   : > { %1903 = vmatpush3.bf16.msra.mxu1 %v2145_v20  ;;  %1882 = vmatprep.subr.bf16.mxu0 %v2146_v21  ;;  %v333_v21 = vld [vmem:[#allocation2] sm:$0xff] }
  0x61   : > { %1904 = vmatprep.subr.bf16.mxu1 %v2147_v22 }
  0x63   : > { %1883 = vmatpush3.bf16.msra.mxu0 %v2148_v23 }
  0x64   : > { %1905 = vmatpush3.bf16.msra.mxu1 %v2149_v24  ;;  %1884 = vmatprep.subr.bf16.mxu0 %v2150_v25  ;;  %v1406_v24 = vld [vmem:[%s2474_s3] sm:$0xff] (!%p1782_p7)  ;;  %v1407_v25 = vld [vmem:[%s2474_s3 + $0x8] sm:$0xff] (!%p1782_p7) }
  0x65   : > { %1906 = vmatprep.subr.bf16.mxu1 %v2151_v26  ;;  %v1408_v26 = vld [vmem:[%s2474_s3 + $0x10] sm:$0xff] (!%p1782_p7) }
  0x67   : > { %1885 = vmatpush3.bf16.msra.mxu0 %v2152_v27  ;;  %v2199_v27 = vmov (!%p1782_p7), 0.0|0.0  }
  0x68   : > { %1907 = vmatpush3.bf16.msra.mxu1 %v2153_v28  ;;  %1886 = vmatprep.subr.bf16.mxu0 %v2154_v29  ;;  %v2003_v28 = vpack.c.bf16 (!%p1782_p7), %v1407_v25, %v1406_v24  ;;  %v1409_v29 = vld [vmem:[%s2474_s3 + $0x18] sm:$0xff] (!%p1782_p7) }
  0x69   : > { %1908 = vmatprep.subr.bf16.mxu1 %v2155_v30  ;;  %v2201_v30 = vmov (!%p1782_p7), 0.0  }
  0x6b   : > { %1887 = vmatpush3.bf16.msra.mxu0 %v2156_v31  ;;  %v2006_v31 = vpack.c.bf16 (!%p1782_p7), %v1409_v29, %v1408_v26 }
  0x6c   : > { %1909 = vmatpush3.bf16.msra.mxu1 %v2157_v32  ;;  %1888 = vmatprep.subr.bf16.mxu0 %v2158_v33  ;;  %v1410_v32 = vld [vmem:[%s2474_s3 + $0x20] sm:$0xff] (!%p1782_p7)  ;;  %v1411_v33 = vld [vmem:[%s2474_s3 + $0x28] sm:$0xff] (!%p1782_p7) }
  0x6d   : > { %1910 = vmatprep.subr.bf16.mxu1 %v2159_v34  ;;  %v1500_v34 = vld [vmem:[%s2476_s5] sm:$0xff] (!%p1782_p7) }
  0x6f   : > { %1889 = vmatpush3.bf16.msra.mxu0 %v2160_v35  ;;  %v1501_v35 = vld [vmem:[%s2476_s5 + $0x8] sm:$0xff] (!%p1782_p7) }
  0x70   : > { %1911 = vmatpush3.bf16.msra.mxu1 %v2161_v36  ;;  %1890 = vmatprep.subr.bf16.mxu0 %v2162_v37  ;;  %v1502_v36 = vld [vmem:[%s2476_s5 + $0x10] sm:$0xff] (!%p1782_p7)  ;;  %v2009_v37 = vpack.c.bf16 (!%p1782_p7), %v1411_v33, %v1410_v32 }
  0x71   : > { %1912 = vmatprep.subr.bf16.mxu1 %v2163_v38  ;;  %v2027_v38 = vpack.c.bf16 (!%p1782_p7), %v1501_v35, %v1500_v34 }
  0x73   : > { %1891 = vmatpush3.bf16.msra.mxu0 %v2164_v39  ;;  %v1503_v39 = vld [vmem:[%s2476_s5 + $0x18] sm:$0xff] (!%p1782_p7) }
  0x74   : > { %1913 = vmatpush3.bf16.msra.mxu1 %v2165_v40  ;;  %1892 = vmatprep.subr.bf16.mxu0 %v2166_v41  ;;  %v1412_v40 = vld [vmem:[%s2474_s3 + $0x30] sm:$0xff] (!%p1782_p7)  ;;  %v1413_v41 = vld [vmem:[%s2474_s3 + $0x38] sm:$0xff] (!%p1782_p7) }
  0x75   : > { %1914 = vmatprep.subr.bf16.mxu1 %v2167_v42  ;;  %v2030_v42 = vpack.c.bf16 (!%p1782_p7), %v1503_v39, %v1502_v36  ;;  %v2012_v45 = vpack.c.bf16 (!%p1782_p7), %v1413_v41, %v1412_v40 }
  0x77   : > { %1893 = vmatpush3.bf16.msra.mxu0 %v2168_v43  ;;  %v1504_v43 = vld [vmem:[%s2476_s5 + $0x20] sm:$0xff] (!%p1782_p7) }
  0x78   : > { %1915 = vmatpush3.bf16.msra.mxu1 %v2169_v44  ;;  %2002 = vmatprep.subr.bf16.mxu0 (!%p1782_p7), %v2199_v27  ;;  %v1505_v44 = vld [vmem:[%s2476_s5 + $0x28] sm:$0xff] (!%p1782_p7) }
  0x79   : > { %2026 = vmatprep.subr.bf16.mxu1 (!%p1782_p7), %v2199_v27  ;;  %v2033_v48 = vpack.c.bf16 (!%p1782_p7), %v1505_v44, %v1504_v43 }
  0x7a   : > { %1343 = vmatmul.mubr.bf16.vlgmr.msra.gmra.mrb[8].mxu0 %v1682_v47  ;;  %v1415_v47 = vld [vmem:[%s2474_s3 + $0x48] sm:$0xff] (!%p1782_p7) }
  0x7b   : > { %1383 = vmatmul.mubr.bf16.vlgmr.msra.gmra.mrb[8].mxu1 %v1684_v49  ;;  %1980 = vmatprep.mubr.msk.f32.mxu0 (!%p1782_p7), %vm2200_vm0, %v2201_v30  ;;  %v2015_v49 = vpack.c.bf16 (!%p1782_p7), %v1415_v47, %v1414_v46 }
  0x7c   : > { %1999 = vmatprep.mubr.msk.f32.mxu1 (!%p1782_p7), %vm2200_vm0, %v2201_v30  ;;  %2004 = vmatpush3.bf16.msra.mxu0 (!%p1782_p7), %v2003_v28 }
  0x7d   : > { %2005 = vmatprep.subr.bf16.mxu0 (!%p1782_p7), %v2199_v27  ;;  %2028 = vmatpush3.bf16.msra.mxu1 (!%p1782_p7), %v2027_v38 }
  0x7e   : > { %2029 = vmatprep.subr.bf16.mxu1 (!%p1782_p7), %v2199_v27 }
  0x80   : > { %2007 = vmatpush3.bf16.msra.mxu0 (!%p1782_p7), %v2006_v31 }
  0x81   : > { %2008 = vmatprep.subr.bf16.mxu0 (!%p1782_p7), %v2199_v27  ;;  %2031 = vmatpush3.bf16.msra.mxu1 (!%p1782_p7), %v2030_v42 }
  0x82   : > { %2032 = vmatprep.subr.bf16.mxu1 (!%p1782_p7), %v2199_v27 }
  0x84   : > { %2010 = vmatpush3.bf16.msra.mxu0 (!%p1782_p7), %v2009_v37 }
  0x85   : > { %2011 = vmatprep.subr.bf16.mxu0 (!%p1782_p7), %v2199_v27  ;;  %2034 = vmatpush3.bf16.msra.mxu1 (!%p1782_p7), %v2033_v48 }
  0x86   : > { %2035 = vmatprep.subr.bf16.mxu1 (!%p1782_p7), %v2199_v27 }
  0x88   : > { %2013 = vmatpush3.bf16.msra.mxu0 (!%p1782_p7), %v2012_v45 }
  0x89   : > { %2014 = vmatprep.subr.bf16.mxu0 (!%p1782_p7), %v2199_v27 }
  0x8c   : > { %2016 = vmatpush3.bf16.msra.mxu0 (!%p1782_p7), %v2015_v49 }
  0x8d   : > { %2017 = vmatprep.subr.bf16.mxu0 (!%p1782_p7), %v2199_v27 }
 0x10d   : > { %v1806_v51 = vpop.f32.mrb[0].mxu0 }
 0x10e   : > { %v1828_v52 = vpop.f32.mrb[0].mxu1  ;;  %v1807_v53 = vpop.f32.mrb[1].mxu0 }
 0x10f   : > { %v1829_v54 = vpop.f32.mrb[1].mxu1  ;;  %v1808_v55 = vadd.f32 %v1807_v53, %v1806_v51  ;;  %v1809_v57 = vpop.f32.mrb[2].mxu0  ;;  %v1417_v51 = vld [vmem:[%s2474_s3 + $0x58] sm:$0xff] (!%p1782_p7)  ;;  %v1418_v53 = vld [vmem:[%s2474_s3 + $0x60] sm:$0xff] (!%p1782_p7) }
 0x110   : > { %v1830_v56 = vadd.f32 %v1829_v54, %v1828_v52  ;;  %v1831_v58 = vpop.f32.mrb[2].mxu1  ;;  %v1810_v59 = vpop.f32.mrb[3].mxu0  ;;  %v2018_v52 = vpack.c.bf16 (!%p1782_p7), %v1417_v51, %v1416_v50  ;;  %v1419_v54 = vld [vmem:[%s2474_s3 + $0x68] sm:$0xff] (!%p1782_p7)  ;;  %v1783_v57 = vld [vmem:[%s2473_s2] ss:$0 sm:$0xff] (!%p1782_p7) }
 0x111   : > { %v1832_v60 = vpop.f32.mrb[3].mxu1  ;;  %v1420_v58 = vld [vmem:[%s2474_s3 + $0x70] sm:$0xff] (!%p1782_p7)  ;;  %v1421_v59 = vld [vmem:[%s2474_s3 + $0x78] sm:$0xff] (!%p1782_p7) }
 0x112   : > { %v1225_v61 = vadd.f32 %v1830_v56, %v1808_v55  ;;  %2019 = vmatpush3.bf16.msra.mxu0 (!%p1782_p7), %v2018_v52  ;;  %v2021_v55 = vpack.c.bf16 (!%p1782_p7), %v1419_v54, %v1418_v53 }
 0x113   : > { %2020 = vmatprep.subr.bf16.mxu0 (!%p1782_p7), %v2199_v27 }
 0x116   : > { %2022 = vmatpush3.bf16.msra.mxu0 (!%p1782_p7), %v2021_v55 }
 0x117   : > { %2023 = vmatprep.subr.bf16.mxu0 (!%p1782_p7), %v2199_v27 }
 0x12d   : > { %v1850_v62 = vpop.f32.mrb[4].mxu0 }
 0x12e   : > { %v1872_v63 = vpop.f32.mrb[4].mxu1  ;;  %v1851_v0 = vpop.f32.mrb[5].mxu0 }
 0x12f   : > { %v1873_v1 = vpop.f32.mrb[5].mxu1  ;;  %v1852_v2 = vadd.f32 %v1851_v0, %v1850_v62  ;;  %v1853_v4 = vpop.f32.mrb[6].mxu0  ;;  %v1507_v0 = vld [vmem:[%s2476_s5 + $0x38] sm:$0xff] (!%p1782_p7) }
 0x130   : > { %v1874_v3 = vadd.f32 %v1873_v1, %v1872_v63  ;;  %v1875_v5 = vpop.f32.mrb[6].mxu1  ;;  %v1854_v6 = vpop.f32.mrb[7].mxu0  ;;  %v1506_v63 = vld [vmem:[%s2476_s5 + $0x30] sm:$0xff] (!%p1782_p7) }
 0x131   : > { %v1876_v7 = vpop.f32.mrb[7].mxu1  ;;  %v1265_v8 = vadd.f32 %v1852_v2, %v1225_v61  ;;  %v2024_v61 = vpack.c.bf16 (!%p1782_p7), %v1421_v59, %v1420_v58  ;;  %v2036_v1 = vpack.c.bf16 (!%p1782_p7), %v1507_v0, %v1506_v63  ;;  %v1784_v2 = vld [vmem:[%s2475_s4] ss:$0 sm:$0xff] (!%p1782_p7) }
 0x132   : > { %v1785_v7 = vld [vmem:[%s2477_s6] ss:$0 sm:$0xff] (!%p1782_p7) }
 0x133   : > { %v1305_v9 = vadd.f32 %v1874_v3, %v1265_v8  ;;  %2025 = vmatpush3.bf16.msra.mxu0 (!%p1782_p7), %v2024_v61  ;;  %2037 = vmatpush3.bf16.msra.mxu1 (!%p1782_p7), %v2036_v1 }
 0x14d   : > { %v1894_v10 = vpop.f32.mrb[8].mxu0 }
 0x14e   : > { %v1916_v11 = vpop.f32.mrb[8].mxu1  ;;  %v1895_v12 = vpop.f32.mrb[9].mxu0 }
 0x14f   : > { %v1896_v13 = vadd.f32 %v1895_v12, %v1894_v10  ;;  %v1917_v14 = vpop.f32.mrb[9].mxu1  ;;  %v1897_v15 = vpop.f32.mrb[10].mxu0 }
 0x150   : > { %v1918_v16 = vadd.f32 %v1917_v14, %v1916_v11  ;;  %v1919_v17 = vpop.f32.mrb[10].mxu1  ;;  %v1898_v18 = vpop.f32.mrb[11].mxu0 }
 0x151   : > { %v1345_v19 = vadd.f32 %v1896_v13, %v1305_v9  ;;  %v1920_v20 = vpop.f32.mrb[11].mxu1  ;;  %1395 = sbr.rel (%p1782_p7) target bundleno = 786 (0x312), region = 56 }
 0x153   : > { %v1385_v22 = vadd.f32 %v1918_v16, %v1345_v19 }
 0x155   : > { %v1390_v23 = vadd.f32 %v1385_v22, %v333_v21 }
 0x157   : > { %1391 = vst [vmem:[#allocation2] sm:$0xff] %v1390_v23 }
 0x15e   : > { %v1396_v56 = vld [vmem:[#allocation2] sm:$0xff] }
 0x15f   : > { %v1404_v60 = vadd.f32 %v1783_v57, %v1396_v56 }
 0x161   : > { %v1405_v62 = vmax.f32 %v1404_v60, 0.0 }
 0x163   : > { %1981 = vmatmul.mubr.f32.vlgmr.msra.gmra.mrb[0].mxu0 %v1405_v62 }
 0x236   : > { %v1495_v3 = vpop.f32.mrb[0].mxu0 }
 0x237   : > { %v1496_v4 = vadd.f32 %v1784_v2, %v1495_v3  ;;  %v1982_v5 = vpop.f32.mrb[1].mxu0 }
 0x239   : > { %v1499_v6 = vmax.f32 %v1496_v4, 0.0 }
 0x23b   : > { %2000 = vmatmul.mubr.msk.f32.vlgmr.msra.gmra.mrb[0].mxu1 %vm1515_vm1, %v1499_v6 }
 0x30e   : > { %v1585_v8 = vpop.f32.mrb[0].mxu1 }
 0x30f   : > { %v1586_v9 = vadd.f32 %v1785_v7, %v1585_v8  ;;  %v2001_v10 = vpop.f32.mrb[1].mxu1 }
 0x311   : > { %1589 = vst [vmem:[%s2478_s7] sm:$0xff] %v1586_v9 }
 0x312 PF: > { %s17_s26 = sadd.s32 1, %s2196_s26   ;;  %s2479_s24 = smov %s2192_s25 }
 0x313   : > { %p14_p8 = scmp.ge.s32.totalorder %s17_s26, 10   ;;  %s2480_s25 = smov %s2482_s27 }
 0x315   :  { %16 = sbr.rel (!%p14_p8) target bundleno = 2 (0x2), region = 89 }

</bundles_post_ra>
